<compile_context>
chip_gen: v7x
topology: tpu7x:2x2x1
jax: 0.10.0
libtpu: 0.0.40
codegen_flags: <defaults>
</compile_context>

<pallas_src>
import functools

import jax
import jax.numpy as jnp
import numpy as np
from jax.experimental import pallas as pl
from jax.experimental.pallas import tpu as pltpu


def _convlstm_kernel(p_ref, c_ref, w_ref, b_ref, h_out_ref, c_out_ref):
    # p_ref : (1, Kpad, HW)   bf16  im2col patches for this batch element
    # c_ref : (1, hid, HW)    f32   current cell state
    # w_ref : (4*hid, Kpad)   bf16  flattened conv weight
    # b_ref : (4*hid, 1)      f32   bias (broadcast along lanes)
    # h_out_ref, c_out_ref : (1, hid, HW)
    hid = c_ref.shape[1]

    # Single fused MXU matmul: (4*hid, Kpad) x (Kpad, HW) -> (4*hid, HW) f32.
    gates = jnp.dot(w_ref[...], p_ref[0], preferred_element_type=jnp.float32)
    gates = gates + b_ref[...]                      # (4*hid, 1) lane-broadcast

    # Gate split along sublanes (multiples of 8) -> free vreg-subset slices.
    i = jax.nn.sigmoid(gates[0 * hid:1 * hid])
    f = jax.nn.sigmoid(gates[1 * hid:2 * hid])
    o = jax.nn.sigmoid(gates[2 * hid:3 * hid])
    g = jnp.tanh(gates[3 * hid:4 * hid])

    c_curr = c_ref[0].astype(jnp.float32)           # (hid, HW), lane-dense
    c_next = f * c_curr + i * g
    h_next = o * jnp.tanh(c_next)

    h_out_ref[0] = h_next.astype(h_out_ref.dtype)   # lane-dense (hid, 256)
    c_out_ref[0] = c_next.astype(c_out_ref.dtype)


@functools.partial(jax.jit, static_argnames=("kernel_size",))
def convlstm_forward(x_nchw, h_nchw, c_nchw, w_oihw, bias, *, kernel_size):
    """ConvLSTM cell forward. Inputs/outputs in PyTorch NCHW convention."""
    Kh, Kw = kernel_size
    ph, pw = Kh // 2, Kw // 2

    B, Cin, H, W = x_nchw.shape
    hid = h_nchw.shape[1]
    Ctot = Cin + hid
    C4 = 4 * hid
    HW = H * W
    K = Kh * Kw * Ctot
    Kpad = ((K + 127) // 128) * 128                 # MXU-aligned contraction

    # im2col directly in the native NCHW layout (no transposes anywhere).
    comb = jnp.concatenate([x_nchw, h_nchw], axis=1)              # (B,Ctot,H,W)
    comb_pad = jnp.pad(comb, ((0, 0), (0, 0), (ph, ph), (pw, pw)))
    taps = []
    for kh in range(Kh):
        for kw in range(Kw):
            taps.append(
                comb_pad[:, :, kh:kh + H, kw:kw + W].reshape(B, Ctot, HW))
    patches = jnp.concatenate(taps, axis=1)                       # (B, K, HW)
    patches = jnp.pad(patches, ((0, 0), (0, Kpad - K), (0, 0)))
    patches = patches.astype(jnp.bfloat16)

    # OIHW -> (4*hid, Kh*Kw*Ctot) with the same (kh, kw, c) ordering as P.
    w_flat = jnp.transpose(w_oihw, (0, 2, 3, 1)).reshape(C4, K)
    w_flat = jnp.pad(w_flat, ((0, 0), (0, Kpad - K))).astype(jnp.bfloat16)
    b_col = bias.reshape(C4, 1).astype(jnp.float32)

    c_flat = c_nchw.reshape(B, hid, HW)              # free reshape (contiguous)

    h_next, c_next = pl.pallas_call(
        _convlstm_kernel,
        out_shape=(
            jax.ShapeDtypeStruct((B, hid, HW), x_nchw.dtype),
            jax.ShapeDtypeStruct((B, hid, HW), x_nchw.dtype),
        ),
        grid_spec=pltpu.PrefetchScalarGridSpec(
            num_scalar_prefetch=0,
            grid=(B,),
            in_specs=[
                pl.BlockSpec((1, Kpad, HW), lambda b: (b, 0, 0)),
                pl.BlockSpec((1, hid, HW), lambda b: (b, 0, 0)),
                pl.BlockSpec((C4, Kpad), lambda b: (0, 0)),
                pl.BlockSpec((C4, 1), lambda b: (0, 0)),
            ],
            out_specs=[
                pl.BlockSpec((1, hid, HW), lambda b: (b, 0, 0)),
                pl.BlockSpec((1, hid, HW), lambda b: (b, 0, 0)),
            ],
        ),
        compiler_params=pltpu.CompilerParams(
            dimension_semantics=("parallel",)),
    )(patches, c_flat, w_flat, b_col)

    # Free reshapes back to NCHW.
    return h_next.reshape(B, hid, H, W), c_next.reshape(B, hid, H, W)


def _reference(x, h, c, w, b, kernel_size):
    """Pure-JAX f32 reference mirroring the PyTorch module (NCHW)."""
    Kh, Kw = kernel_size
    ph, pw = Kh // 2, Kw // 2
    comb = jnp.concatenate([x, h], axis=1)
    out = jax.lax.conv_general_dilated(
        comb, w, window_strides=(1, 1), padding=((ph, ph), (pw, pw)),
        dimension_numbers=("NCHW", "OIHW", "NCHW"))
    out = out + b[None, :, None, None]
    cc_i, cc_f, cc_o, cc_g = jnp.split(out, 4, axis=1)
    i = jax.nn.sigmoid(cc_i)
    f = jax.nn.sigmoid(cc_f)
    o = jax.nn.sigmoid(cc_o)
    g = jnp.tanh(cc_g)
    c_next = f * c + i * g
    h_next = o * jnp.tanh(c_next)
    return h_next, c_next


if __name__ == "__main__":
    # Module config (matches ConvLSTMnode __init__): input_size=(16,16),
    # channel_input=4, hidden_size=32, kernel_size=(3,3), bias=True.
    B, Cin, H, W = 2, 4, 16, 16
    hid = 32
    ksize = (3, 3)
    Ctot = Cin + hid

    key = jax.random.PRNGKey(0)
    kx, kh, kc, kw, kb = jax.random.split(key, 5)

    x = jax.random.normal(kx, (B, Cin, H, W), jnp.float32)
    h0 = jax.random.normal(kh, (B, hid, H, W), jnp.float32)
    c0 = jax.random.normal(kc, (B, hid, H, W), jnp.float32)

    # Deterministic synthetic parameters (Conv2d: OIHW weight + bias).
    fan_in = Ctot * ksize[0] * ksize[1]
    w = jax.random.normal(kw, (4 * hid, Ctot, ksize[0], ksize[1]),
                          jnp.float32) * (1.0 / np.sqrt(fan_in))
    b = jax.random.normal(kb, (4 * hid,), jnp.float32) * 0.1

    h_next, c_next = convlstm_forward(x, h0, c0, w, b, kernel_size=ksize)
    jax.block_until_ready((h_next, c_next))

    h_ref, c_ref = _reference(x, h0, c0, w, b, ksize)
    # bf16 MXU matmul (f32 accumulate) vs f32 reference -> loosened tolerance.
    np.testing.assert_allclose(np.asarray(h_next), np.asarray(h_ref),
                               rtol=1e-1, atol=1e-1)
    np.testing.assert_allclose(np.asarray(c_next), np.asarray(c_ref),
                               rtol=1e-1, atol=1e-1)
    print("KERNEL_OK")
</pallas_src>

<mosaic_0001>
module attributes {stable_mosaic.version = 11 : i64} {
  func.func @_convlstm_kernel(%arg0: i32, %arg1: memref<1x384x256xbf16, #tpu.memory_space<vmem>>, %arg2: memref<1x32x256xf32, #tpu.memory_space<vmem>>, %arg3: memref<128x384xbf16, #tpu.memory_space<vmem>>, %arg4: memref<128x1xf32, #tpu.memory_space<vmem>>, %arg5: memref<1x32x256xf32, #tpu.memory_space<vmem>>, %arg6: memref<1x32x256xf32, #tpu.memory_space<vmem>>) attributes {dimension_semantics = [#tpu.dimension_semantics<parallel>], iteration_bounds = array<i64: 2>, scalar_prefetch = 0 : i64, scratch_operands = 0 : i64, tpu.core_type = #tpu.core_type<tc>, window_params = [{transform_indices = @transform_0, window_bounds = array<i64: 1, 384, 256>}, {transform_indices = @transform_1, window_bounds = array<i64: 1, 32, 256>}, {pipeline_mode = #tpu.pipeline_mode<synchronous>, transform_indices = @transform_2, window_bounds = array<i64: 128, 384>}, {pipeline_mode = #tpu.pipeline_mode<synchronous>, transform_indices = @transform_3, window_bounds = array<i64: 128, 1>}, {transform_indices = @transform_4, window_bounds = array<i64: 1, 32, 256>}, {transform_indices = @transform_5, window_bounds = array<i64: 1, 32, 256>}]} {
    %c0 = arith.constant 0 : index
    %c0_0 = arith.constant 0 : index
    %0 = vector.load %arg3[%c0, %c0_0] : memref<128x384xbf16, #tpu.memory_space<vmem>>, vector<128x384xbf16>
    %c0_1 = arith.constant 0 : index
    %c0_2 = arith.constant 0 : index
    %c0_3 = arith.constant 0 : index
    %1 = vector.load %arg1[%c0_1, %c0_2, %c0_3] : memref<1x384x256xbf16, #tpu.memory_space<vmem>>, vector<1x384x256xbf16>
    %2 = vector.shape_cast %1 : vector<1x384x256xbf16> to vector<384x256xbf16>
    %cst = arith.constant dense<0.000000e+00> : vector<128x256xf32>
    %3 = tpu.matmul %0, %2, %cst {dimension_numbers = #tpu.dot_dimension_numbers<[1], [0], [0], [1], [0, 0, 1, 1], [], []>} : vector<128x384xbf16>, vector<384x256xbf16>, vector<128x256xf32> -> vector<128x256xf32>
    %c0_4 = arith.constant 0 : index
    %c0_5 = arith.constant 0 : index
    %4 = vector.load %arg4[%c0_4, %c0_5] : memref<128x1xf32, #tpu.memory_space<vmem>>, vector<128x1xf32>
    %5 = vector.broadcast %4 : vector<128x1xf32> to vector<128x256xf32>
    %6 = arith.addf %3, %5 : vector<128x256xf32>
    %7 = vector.extract_strided_slice %6 {offsets = [0, 0], sizes = [32, 256], strides = [1, 1]} : vector<128x256xf32> to vector<32x256xf32>
    %8 = arith.negf %7 : vector<32x256xf32>
    %9 = math.exp %8 : vector<32x256xf32>
    %cst_6 = arith.constant 1.000000e+00 : f32
    %10 = vector.broadcast %cst_6 : f32 to vector<32x256xf32>
    %11 = arith.addf %10, %9 : vector<32x256xf32>
    %12 = arith.divf %10, %11 : vector<32x256xf32>
    %13 = vector.extract_strided_slice %6 {offsets = [32, 0], sizes = [32, 256], strides = [1, 1]} : vector<128x256xf32> to vector<32x256xf32>
    %14 = arith.negf %13 : vector<32x256xf32>
    %15 = math.exp %14 : vector<32x256xf32>
    %cst_7 = arith.constant 1.000000e+00 : f32
    %16 = vector.broadcast %cst_7 : f32 to vector<32x256xf32>
    %17 = arith.addf %16, %15 : vector<32x256xf32>
    %18 = arith.divf %16, %17 : vector<32x256xf32>
    %19 = vector.extract_strided_slice %6 {offsets = [64, 0], sizes = [32, 256], strides = [1, 1]} : vector<128x256xf32> to vector<32x256xf32>
    %20 = arith.negf %19 : vector<32x256xf32>
    %21 = math.exp %20 : vector<32x256xf32>
    %cst_8 = arith.constant 1.000000e+00 : f32
    %22 = vector.broadcast %cst_8 : f32 to vector<32x256xf32>
    %23 = arith.addf %22, %21 : vector<32x256xf32>
    %24 = arith.divf %22, %23 : vector<32x256xf32>
    %25 = vector.extract_strided_slice %6 {offsets = [96, 0], sizes = [32, 256], strides = [1, 1]} : vector<128x256xf32> to vector<32x256xf32>
    %26 = math.tanh %25 : vector<32x256xf32>
    %c0_9 = arith.constant 0 : index
    %c0_10 = arith.constant 0 : index
    %c0_11 = arith.constant 0 : index
    %27 = vector.load %arg2[%c0_9, %c0_10, %c0_11] : memref<1x32x256xf32, #tpu.memory_space<vmem>>, vector<1x32x256xf32>
    %28 = vector.shape_cast %27 : vector<1x32x256xf32> to vector<32x256xf32>
    %29 = arith.mulf %18, %28 : vector<32x256xf32>
    %30 = arith.mulf %12, %26 : vector<32x256xf32>
    %31 = arith.addf %29, %30 : vector<32x256xf32>
    %32 = math.tanh %31 : vector<32x256xf32>
    %33 = arith.mulf %24, %32 : vector<32x256xf32>
    %c0_12 = arith.constant 0 : index
    %c0_13 = arith.constant 0 : index
    %c0_14 = arith.constant 0 : index
    %34 = vector.load %arg5[%c0_12, %c0_13, %c0_14] : memref<1x32x256xf32, #tpu.memory_space<vmem>>, vector<1x32x256xf32>
    %35 = vector.shape_cast %34 : vector<1x32x256xf32> to vector<32x256xf32>
    %36 = vector.shape_cast %33 : vector<32x256xf32> to vector<1x32x256xf32>
    tpu.vector_store %arg5[%c0_12, %c0_13, %c0_14], %36 {strides = array<i32>} : memref<1x32x256xf32, #tpu.memory_space<vmem>>, vector<1x32x256xf32>,
    %c0_15 = arith.constant 0 : index
    %c0_16 = arith.constant 0 : index
    %c0_17 = arith.constant 0 : index
    %37 = vector.load %arg6[%c0_15, %c0_16, %c0_17] : memref<1x32x256xf32, #tpu.memory_space<vmem>>, vector<1x32x256xf32>
    %38 = vector.shape_cast %37 : vector<1x32x256xf32> to vector<32x256xf32>
    %39 = vector.shape_cast %31 : vector<32x256xf32> to vector<1x32x256xf32>
    tpu.vector_store %arg6[%c0_15, %c0_16, %c0_17], %39 {strides = array<i32>} : memref<1x32x256xf32, #tpu.memory_space<vmem>>, vector<1x32x256xf32>,
    return
  }
  func.func @transform_0(%arg0: i32) -> (i32, i32, i32) {
    %c0_i32 = arith.constant 0 : i32
    %c0_i32_0 = arith.constant 0 : i32
    %c0_i32_1 = arith.constant 0 : i32
    return %arg0, %c0_i32, %c0_i32_0 : i32, i32, i32
  }
  func.func @transform_1(%arg0: i32) -> (i32, i32, i32) {
    %c0_i32 = arith.constant 0 : i32
    %c0_i32_0 = arith.constant 0 : i32
    %c0_i32_1 = arith.constant 0 : i32
    return %arg0, %c0_i32, %c0_i32_0 : i32, i32, i32
  }
  func.func @transform_2(%arg0: i32) -> (i32, i32) {
    %c0_i32 = arith.constant 0 : i32
    %c0_i32_0 = arith.constant 0 : i32
    %c0_i32_1 = arith.constant 0 : i32
    return %c0_i32, %c0_i32_0 : i32, i32
  }
  func.func @transform_3(%arg0: i32) -> (i32, i32) {
    %c0_i32 = arith.constant 0 : i32
    %c0_i32_0 = arith.constant 0 : i32
    %c0_i32_1 = arith.constant 0 : i32
    return %c0_i32, %c0_i32_0 : i32, i32
  }
  func.func @transform_4(%arg0: i32) -> (i32, i32, i32) {
    %c0_i32 = arith.constant 0 : i32
    %c0_i32_0 = arith.constant 0 : i32
    %c0_i32_1 = arith.constant 0 : i32
    return %arg0, %c0_i32, %c0_i32_0 : i32, i32, i32
  }
  func.func @transform_5(%arg0: i32) -> (i32, i32, i32) {
    %c0_i32 = arith.constant 0 : i32
    %c0_i32_0 = arith.constant 0 : i32
    %c0_i32_1 = arith.constant 0 : i32
    return %arg0, %c0_i32, %c0_i32_0 : i32, i32, i32
  }
}

</mosaic_0001>

<bundles_post_ra>
// kernel: convlstm_forward.1
= control target key start
LH: loop header
LB: loop body
LE: loop exit
PB: predicated region body
PF: predicated region fallthrough
CT: control target
= control target key end

     0   :  { %s1805_s18 = smov 0   ;;  %s2155_s0 = inlined_call_operand.vmem [shape: bf16[2,384,256], index: 0, kind: input, shape index: {}]   ;;  %s2156_s1 = inlined_call_operand.vmem [shape: f32[2,32,256], index: 1, kind: input, shape index: {}]   ;;  %s2157_s2 = inlined_call_operand.vmem [shape: bf16[128,384], index: 2, kind: input, shape index: {}]   ;;  %s2158_s3 = inlined_call_operand.vmem [shape: f32[128,1], index: 3, kind: input, shape index: {}]   ;;  %s2159_s4 = inlined_call_operand.vmem [shape: f32[2,32,256], index: 4, kind: output, shape index: {0}]   ;;  %s2160_s5 = inlined_call_operand.vmem [shape: f32[2,32,256], index: 5, kind: output, shape index: {1}]  }
   0x1 LB: > { %s1345_s19 = sadd.s32 4294967295, %s1772_s18   ;;  %p1349_p0 = scmp.ge.s32.totalorder %s1772_s18, 1  ;;  %s1772_s18 = sphi %s1805_s18, %s16_s18  }
   0x2   : > { %p200_p1 = scmp.lt.s32.totalorder %s1772_s18, 3 }
   0x4   : > { %p201_p2 = pnand %p1349_p0, %p200_p1 }
   0x5   : > { %p238_p3 = scmp.lt.s32.totalorder (!%p201_p2), %s1345_s19, 1  ;;  %v1774_v0 = vmov (!%p201_p2), 0   ;;  %v1608_v1 = vld [vmem:[%s2157_s2 + $0x4] ss:$12 sps:$4 sm:$0xff] (!%p201_p2)   ;;  %v1609_v41 = vld [vmem:[%s2157_s2 + $0x8] ss:$12 sps:$4 sm:$0xff] (!%p201_p2)  }
   0x6   : > { %204 = sbr.rel (%p201_p2) target bundleno = 391 (0x187), region = 36  ;;  %948 = vmatprep.mubr.bf16.mxu0 (!%p201_p2), %v1774_v0  ;;  %1532 = vset.pattern.permute.xlu0 (!%p201_p2), %v1774_v0  ;;  %v339_v43 = vld [vmem:[%s2158_s3] sm:$0xff] (!%p201_p2)  ;;  %v341_v45 = vld [vmem:[%s2158_s3 + $0x10] sm:$0xff] (!%p201_p2)  ;;  %v340_v46 = vld [vmem:[%s2158_s3 + $0x8] sm:$0xff] (!%p201_p2) }
   0x7   : > { %1533 = vset.pattern.permute.xlu1 (!%p201_p2), %v1774_v0  ;;  %835 = vmatprep.mubr.bf16.mxu1 (!%p201_p2), %v1608_v1  ;;  %v342_v47 = vld [vmem:[%s2158_s3 + $0x18] sm:$0xff] (!%p201_p2)  ;;  %v1612_v50 = vld [vmem:[%s2157_s2 + $0x20] ss:$12 sps:$4 sm:$0xff] (!%p201_p2)   ;;  %v345_v55 = vld [vmem:[%s2158_s3 + $0x30] sm:$0xff] (!%p201_p2) }
   0x8   : > { %357 = vperm.xlu0 (!%p201_p2), %1532, %v339_v43   ;;  %367 = vperm.xlu1 (!%p201_p2), %1533, %v341_v45   ;;  %v343_v51 = vld [vmem:[%s2158_s3 + $0x20] sm:$0xff] (!%p201_p2)  ;;  %v344_v52 = vld [vmem:[%s2158_s3 + $0x28] sm:$0xff] (!%p201_p2)  ;;  %v346_v56 = vld [vmem:[%s2158_s3 + $0x38] sm:$0xff] (!%p201_p2) }
   0x9   : > { %v1616_v59 = vld [vmem:[%s2157_s2 + $0x38] ss:$12 sps:$4 sm:$0xff] (!%p201_p2)   ;;  %v348_v61 = vld [vmem:[%s2158_s3 + $0x48] sm:$0xff] (!%p201_p2)  ;;  %v349_v63 = vld [vmem:[%s2158_s3 + $0x50] sm:$0xff] (!%p201_p2) }
   0xa   : > { %v347_v60 = vld [vmem:[%s2158_s3 + $0x40] sm:$0xff] (!%p201_p2) }
   0xb   : > { %v1606_v1 = vld [vmem:[%s2157_s2] ss:$12 sps:$4 sm:$0xff] (!%p201_p2)  }
   0xc   : > { %362 = vperm.xlu0 (!%p201_p2), %1532, %v340_v46   ;;  %372 = vperm.xlu1 (!%p201_p2), %1533, %v342_v47  }
   0xd   : > { %s2162_s19 = smov (!%p238_p3, %s1345_s19), 1 }
   0xe   : > { %s1522_s22 = smul.u32 384, %s2162_s19 }
  0x10   : > { %s1825_s25 = scalar_lea.vmem %s2155_s0, %s1522_s22  ;;  %377 = vperm.xlu0 %1532, %v343_v51   ;;  %382 = vperm.xlu1 %1533, %v344_v52  }
  0x11   : > { %v1534_v2 = vld [vmem:[%s1825_s25 + $0x4] ss:$8 sps:$4 sm:$0xff]   ;;  %v1536_v3 = vld [vmem:[%s1825_s25] ss:$8 sps:$4 sm:$0xff]   ;;  %v1537_v4 = vld [vmem:[%s1825_s25 + $0x14] ss:$8 sps:$4 sm:$0xff]  }
  0x12   : > { %803 = vmatprep.subr.bf16.mxu1 %v1534_v2  ;;  %v1539_v5 = vld [vmem:[%s1825_s25 + $0x10] ss:$8 sps:$4 sm:$0xff]   ;;  %v1540_v6 = vld [vmem:[%s1825_s25 + $0x24] ss:$8 sps:$4 sm:$0xff]   ;;  %v1542_v7 = vld [vmem:[%s1825_s25 + $0x20] ss:$8 sps:$4 sm:$0xff]  }
  0x13   : > { %804 = vmatpush1.bf16.msra.mxu1 %v1536_v3  ;;  %v1543_v8 = vld [vmem:[%s1825_s25 + $0x34] ss:$8 sps:$4 sm:$0xff]   ;;  %v1545_v9 = vld [vmem:[%s1825_s25 + $0x30] ss:$8 sps:$4 sm:$0xff]   ;;  %v1558_v10 = vld [vmem:[%s1825_s25 + $0x104] ss:$8 sps:$4 sm:$0xff]  }
  0x14   : > { %805 = vmatprep.subr.bf16.mxu1 %v1537_v4  ;;  %v1546_v11 = vld [vmem:[%s1825_s25 + $0x44] ss:$8 sps:$4 sm:$0xff]   ;;  %v1562_v12 = vld [vmem:[%s1825_s25 + $0x100] ss:$8 sps:$4 sm:$0xff]   ;;  %916 = vmatprep.subr.bf16.mxu0 %v1558_v10  ;;  %v1564_v13 = vld [vmem:[%s1825_s25 + $0x114] ss:$8 sps:$4 sm:$0xff]  }
  0x15   : > { %917 = vmatpush1.bf16.msra.mxu0 %v1562_v12  ;;  %v1548_v14 = vld [vmem:[%s1825_s25 + $0x40] ss:$8 sps:$4 sm:$0xff]   ;;  %v1549_v15 = vld [vmem:[%s1825_s25 + $0x54] ss:$8 sps:$4 sm:$0xff]   ;;  %v1568_v16 = vld [vmem:[%s1825_s25 + $0x110] ss:$8 sps:$4 sm:$0xff]   ;;  %387 = vperm.xlu0 %1532, %v345_v55  }
  0x16   : > { %918 = vmatprep.subr.bf16.mxu0 %v1564_v13  ;;  %v1570_v17 = vld [vmem:[%s1825_s25 + $0x124] ss:$8 sps:$4 sm:$0xff]   ;;  %v1551_v18 = vld [vmem:[%s1825_s25 + $0x50] ss:$8 sps:$4 sm:$0xff]   ;;  %v1574_v19 = vld [vmem:[%s1825_s25 + $0x120] ss:$8 sps:$4 sm:$0xff]   ;;  %392 = vperm.xlu1 %1533, %v346_v56  }
  0x17   : > { %806 = vmatpush1.bf16.msra.mxu1 %v1539_v5  ;;  %v1576_v20 = vld [vmem:[%s1825_s25 + $0x134] ss:$8 sps:$4 sm:$0xff]   ;;  %v1552_v21 = vld [vmem:[%s1825_s25 + $0x64] ss:$8 sps:$4 sm:$0xff]   ;;  %v1580_v22 = vld [vmem:[%s1825_s25 + $0x130] ss:$8 sps:$4 sm:$0xff]  }
  0x18   : > { %807 = vmatprep.subr.bf16.mxu1 %v1540_v6  ;;  %v1554_v23 = vld [vmem:[%s1825_s25 + $0x60] ss:$8 sps:$4 sm:$0xff]   ;;  %v1582_v24 = vld [vmem:[%s1825_s25 + $0x144] ss:$8 sps:$4 sm:$0xff]   ;;  %v1555_v25 = vld [vmem:[%s1825_s25 + $0x74] ss:$8 sps:$4 sm:$0xff]  }
  0x19   : > { %919 = vmatpush1.bf16.msra.mxu0 %v1568_v16  ;;  %v1557_v26 = vld [vmem:[%s1825_s25 + $0x70] ss:$8 sps:$4 sm:$0xff]   ;;  %v1586_v27 = vld [vmem:[%s1825_s25 + $0x140] ss:$8 sps:$4 sm:$0xff]   ;;  %v1588_v28 = vld [vmem:[%s1825_s25 + $0x154] ss:$8 sps:$4 sm:$0xff]   ;;  %397 = vperm.xlu0 %1532, %v347_v60  }
  0x1a   : > { %920 = vmatprep.subr.bf16.mxu0 %v1570_v17  ;;  %v1560_v29 = vld [vmem:[%s1825_s25 + $0x84] ss:$8 sps:$4 sm:$0xff]   ;;  %v1592_v30 = vld [vmem:[%s1825_s25 + $0x150] ss:$8 sps:$4 sm:$0xff]   ;;  %v1563_v31 = vld [vmem:[%s1825_s25 + $0x80] ss:$8 sps:$4 sm:$0xff]   ;;  %402 = vperm.xlu1 %1533, %v348_v61  }
  0x1b   : > { %808 = vmatpush1.bf16.msra.mxu1 %v1542_v7  ;;  %v1594_v32 = vld [vmem:[%s1825_s25 + $0x164] ss:$8 sps:$4 sm:$0xff]   ;;  %v1566_v33 = vld [vmem:[%s1825_s25 + $0x94] ss:$8 sps:$4 sm:$0xff]   ;;  %v1569_v34 = vld [vmem:[%s1825_s25 + $0x90] ss:$8 sps:$4 sm:$0xff]  }
  0x1c   : > { %809 = vmatprep.subr.bf16.mxu1 %v1543_v8  ;;  %v1598_v35 = vld [vmem:[%s1825_s25 + $0x160] ss:$8 sps:$4 sm:$0xff]   ;;  %v1600_v36 = vld [vmem:[%s1825_s25 + $0x174] ss:$8 sps:$4 sm:$0xff]   ;;  %v1572_v37 = vld [vmem:[%s1825_s25 + $0xa4] ss:$8 sps:$4 sm:$0xff]  }
  0x1d   : > { %921 = vmatpush1.bf16.msra.mxu0 %v1574_v19  ;;  %v1604_v38 = vld [vmem:[%s1825_s25 + $0x170] ss:$8 sps:$4 sm:$0xff]   ;;  %v1575_v39 = vld [vmem:[%s1825_s25 + $0xa0] ss:$8 sps:$4 sm:$0xff]   ;;  %v1578_v40 = vld [vmem:[%s1825_s25 + $0xb4] ss:$8 sps:$4 sm:$0xff]   ;;  %407 = vperm.xlu0 %1532, %v349_v63  }
  0x1e   : > { %922 = vmatprep.subr.bf16.mxu0 %v1576_v20  ;;  %v1581_v42 = vld [vmem:[%s1825_s25 + $0xb0] ss:$8 sps:$4 sm:$0xff]   ;;  %v1584_v44 = vld [vmem:[%s1825_s25 + $0xc4] ss:$8 sps:$4 sm:$0xff]   ;;  %v1587_v48 = vld [vmem:[%s1825_s25 + $0xc0] ss:$8 sps:$4 sm:$0xff]  }
  0x1f   : > { %810 = vmatpush1.bf16.msra.mxu1 %v1545_v9  ;;  %v1590_v49 = vld [vmem:[%s1825_s25 + $0xd4] ss:$8 sps:$4 sm:$0xff]   ;;  %v1593_v53 = vld [vmem:[%s1825_s25 + $0xd0] ss:$8 sps:$4 sm:$0xff]   ;;  %v1596_v54 = vld [vmem:[%s1825_s25 + $0xe4] ss:$8 sps:$4 sm:$0xff]  }
  0x20   : > { %811 = vmatprep.subr.bf16.mxu1 %v1546_v11  ;;  %v1599_v57 = vld [vmem:[%s1825_s25 + $0xe0] ss:$8 sps:$4 sm:$0xff]   ;;  %v1602_v58 = vld [vmem:[%s1825_s25 + $0xf4] ss:$8 sps:$4 sm:$0xff]   ;;  %v1605_v62 = vld [vmem:[%s1825_s25 + $0xf0] ss:$8 sps:$4 sm:$0xff]  }
  0x21   : > { %923 = vmatpush1.bf16.msra.mxu0 %v1580_v22  ;;  %v350_v2 = vld [vmem:[%s2158_s3 + $0x58] sm:$0xff]  ;;  %v351_v5 = vld [vmem:[%s2158_s3 + $0x60] sm:$0xff]  ;;  %v352_v6 = vld [vmem:[%s2158_s3 + $0x68] sm:$0xff]  ;;  %s2082_s25 = sshll.u32 %s2162_s19, 6 }
  0x22   : > { %924 = vmatprep.subr.bf16.mxu0 %v1582_v24  ;;  %v1610_v3 = vld [vmem:[%s2157_s2 + $0x1c] ss:$12 sps:$4 sm:$0xff]   ;;  %412 = vperm.xlu1 %1533, %v350_v2   ;;  %v353_v7 = vld [vmem:[%s2158_s3 + $0x70] sm:$0xff]  ;;  %v1613_v8 = vld [vmem:[%s2157_s2 + $0x18] ss:$12 sps:$4 sm:$0xff]   ;;  %s2090_s13 = scalar_lea.vmem %s2156_s1, %s2082_s25  ;;  %s2106_s15 = scalar_lea.vmem %s2160_s5, %s2082_s25 }
  0x23   : > { %812 = vmatpush1.bf16.msra.mxu1 %v1548_v14  ;;  %v1620_v4 = vld [vmem:[%s2157_s2 + $0x50] ss:$12 sps:$4 sm:$0xff]   ;;  %417 = vperm.xlu0 %1532, %v351_v5   ;;  %v1614_v10 = vld [vmem:[%s2157_s2 + $0x34] ss:$12 sps:$4 sm:$0xff]   ;;  %v1618_v13 = vld [vmem:[%s2157_s2 + $0x4c] ss:$12 sps:$4 sm:$0xff]   ;;  %s2136_s20 = scalar_lea.vmem %s2159_s4, %s2082_s25 }
  0x24   : > { %813 = vmatprep.subr.bf16.mxu1 %v1549_v15  ;;  %v354_v9 = vld [vmem:[%s2158_s3 + $0x78] sm:$0xff]  ;;  %v1624_v11 = vld [vmem:[%s2157_s2 + $0x68] ss:$12 sps:$4 sm:$0xff]   ;;  %v1628_v14 = vld [vmem:[%s2157_s2 + $0x80] ss:$12 sps:$4 sm:$0xff]  }
  0x25   : > { %925 = vmatpush1.bf16.msra.mxu0 %v1586_v27  ;;  %v1617_v12 = vld [vmem:[%s2157_s2 + $0x30] ss:$12 sps:$4 sm:$0xff]   ;;  %v1621_v15 = vld [vmem:[%s2157_s2 + $0x48] ss:$12 sps:$4 sm:$0xff]   ;;  %v1632_v17 = vld [vmem:[%s2157_s2 + $0x98] ss:$12 sps:$4 sm:$0xff]  }
  0x26   : > { %926 = vmatprep.subr.bf16.mxu0 %v1588_v28  ;;  %422 = vperm.xlu1 %1533, %v352_v6   ;;  %v1622_v16 = vld [vmem:[%s2157_s2 + $0x64] ss:$12 sps:$4 sm:$0xff]   ;;  %v1626_v19 = vld [vmem:[%s2157_s2 + $0x7c] ss:$12 sps:$4 sm:$0xff]   ;;  %v1630_v22 = vld [vmem:[%s2157_s2 + $0x94] ss:$12 sps:$4 sm:$0xff]  }
  0x27   : > { %814 = vmatpush1.bf16.msra.mxu1 %v1551_v18  ;;  %427 = vperm.xlu0 %1532, %v353_v7   ;;  %v1625_v18 = vld [vmem:[%s2157_s2 + $0x60] ss:$12 sps:$4 sm:$0xff]   ;;  %v1636_v20 = vld [vmem:[%s2157_s2 + $0xb0] ss:$12 sps:$4 sm:$0xff]   ;;  %v1637_v24 = vld [vmem:[%s2157_s2 + $0xa8] ss:$12 sps:$4 sm:$0xff]  }
  0x28   : > { %815 = vmatprep.subr.bf16.mxu1 %v1552_v21  ;;  %v1629_v21 = vld [vmem:[%s2157_s2 + $0x78] ss:$12 sps:$4 sm:$0xff]  }
  0x29   : > { %927 = vmatpush1.bf16.msra.mxu0 %v1592_v30 }
  0x2a   : > { %928 = vmatprep.subr.bf16.mxu0 %v1594_v32  ;;  %432 = vperm.xlu1 %1533, %v354_v9  }
  0x2b   : > { %816 = vmatpush1.bf16.msra.mxu1 %v1554_v23  ;;  %v1634_v23 = vld [vmem:[%s2157_s2 + $0xac] ss:$12 sps:$4 sm:$0xff]  }
  0x2c   : > { %817 = vmatprep.subr.bf16.mxu1 %v1555_v25 }
  0x2d   : > { %929 = vmatpush1.bf16.msra.mxu0 %v1598_v35 }
  0x2e   : > { %930 = vmatprep.subr.bf16.mxu0 %v1600_v36 }
  0x2f   : > { %818 = vmatpush1.bf16.msra.mxu1 %v1557_v26 }
  0x30   : > { %819 = vmatprep.subr.bf16.mxu1 %v1560_v29 }
  0x31   : > { %931 = vmatpush1.bf16.msra.mxu0 %v1604_v38 }
  0x33   : > { %820 = vmatpush1.bf16.msra.mxu1 %v1563_v31 }
  0x34   : > { %821 = vmatprep.subr.bf16.mxu1 %v1566_v33  ;;  %949 = vmatmul.mubr.bf16.vlgmr.msra.gmra.mrb[0].mxu0 %v1609_v41 }
  0x35   : > { %958 = vmatprep.mubr.bf16.mxu0 %v1774_v0 }
  0x37   : > { %822 = vmatpush1.bf16.msra.mxu1 %v1569_v34 }
  0x38   : > { %823 = vmatprep.subr.bf16.mxu1 %v1572_v37 }
  0x3b   : > { %824 = vmatpush1.bf16.msra.mxu1 %v1575_v39 }
  0x3c   : > { %825 = vmatprep.subr.bf16.mxu1 %v1578_v40  ;;  %959 = vmatmul.mubr.bf16.gmra.mrb[4].mxu0 %v1612_v50 }
  0x3d   : > { %968 = vmatprep.mubr.bf16.mxu0 %v1774_v0 }
  0x3f   : > { %826 = vmatpush1.bf16.msra.mxu1 %v1581_v42 }
  0x40   : > { %827 = vmatprep.subr.bf16.mxu1 %v1584_v44 }
  0x43   : > { %828 = vmatpush1.bf16.msra.mxu1 %v1587_v48 }
  0x44   : > { %829 = vmatprep.subr.bf16.mxu1 %v1590_v49  ;;  %969 = vmatmul.mubr.bf16.gmra.mrb[8].mxu0 %v1616_v59 }
  0x45   : > { %978 = vmatprep.mubr.bf16.mxu0 %v1774_v0 }
  0x47   : > { %830 = vmatpush1.bf16.msra.mxu1 %v1593_v53 }
  0x48   : > { %831 = vmatprep.subr.bf16.mxu1 %v1596_v54 }
  0x4b   : > { %832 = vmatpush1.bf16.msra.mxu1 %v1599_v57 }
  0x4c   : > { %833 = vmatprep.subr.bf16.mxu1 %v1602_v58  ;;  %979 = vmatmul.mubr.bf16.gmra.mrb[12].mxu0 %v1620_v4 }
  0x4d   : > { %988 = vmatprep.mubr.bf16.mxu0 %v1774_v0 }
  0x4f   : > { %834 = vmatpush1.bf16.msra.mxu1 %v1605_v62 }
  0x52   : > { %836 = vmatmul.mubr.bf16.vlgmr.msra.gmra.mrb[0].mxu1 %v1606_v1 }
  0x53   : > { %845 = vmatprep.mubr.bf16.mxu1 %v1610_v3 }
  0x54   : > { %989 = vmatmul.mubr.bf16.gmra.mrb[16].mxu0 %v1624_v11 }
  0x55   : > { %998 = vmatprep.mubr.bf16.mxu0 %v1774_v0 }
  0x5a   : > { %846 = vmatmul.mubr.bf16.gmra.mrb[4].mxu1 %v1613_v8 }
  0x5b   : > { %855 = vmatprep.mubr.bf16.mxu1 %v1614_v10 }
  0x5c   : > { %999 = vmatmul.mubr.bf16.gmra.mrb[20].mxu0 %v1628_v14 }
  0x5d   : > { %1008 = vmatprep.mubr.bf16.mxu0 %v1774_v0 }
  0x62   : > { %856 = vmatmul.mubr.bf16.gmra.mrb[8].mxu1 %v1617_v12 }
  0x63   : > { %865 = vmatprep.mubr.bf16.mxu1 %v1618_v13 }
  0x64   : > { %1009 = vmatmul.mubr.bf16.gmra.mrb[24].mxu0 %v1632_v17 }
  0x65   : > { %1018 = vmatprep.mubr.bf16.mxu0 %v1774_v0  ;;  %v1633_v0 = vld [vmem:[%s2157_s2 + $0x90] ss:$12 sps:$4 sm:$0xff]  }
  0x6a   : > { %866 = vmatmul.mubr.bf16.gmra.mrb[12].mxu1 %v1621_v15 }
  0x6b   : > { %875 = vmatprep.mubr.bf16.mxu1 %v1622_v16 }
  0x6c   : > { %1019 = vmatmul.mubr.bf16.gmra.mrb[28].mxu0 %v1636_v20 }
  0x72   : > { %876 = vmatmul.mubr.bf16.gmra.mrb[16].mxu1 %v1625_v18 }
  0x73   : > { %885 = vmatprep.mubr.bf16.mxu1 %v1626_v19 }
  0x7a   : > { %886 = vmatmul.mubr.bf16.gmra.mrb[20].mxu1 %v1629_v21 }
  0x7b   : > { %895 = vmatprep.mubr.bf16.mxu1 %v1630_v22 }
  0x82   : > { %896 = vmatmul.mubr.bf16.gmra.mrb[24].mxu1 %v1633_v0 }
  0x83   : > { %905 = vmatprep.mubr.bf16.mxu1 %v1634_v23 }
  0x87   : > { %v358_v33 = vpop.permute.xlu0 %357  ;;  %v368_v49 = vpop.permute.xlu1 %367 }
  0x8a   : > { %906 = vmatmul.mubr.bf16.gmra.mrb[28].mxu1 %v1637_v24 }
  0x8b   : > { %v363_v39 = vpop.permute.xlu0 %362  ;;  %v373_v60 = vpop.permute.xlu1 %372 }
  0x8f   : > { %v378_v14 = vpop.permute.xlu0 %377  ;;  %v383_v19 = vpop.permute.xlu1 %382 }
 0x107   : > { %v950_v25 = vpop.f32.mrb[0].mxu0 }
 0x108   : > { %v952_v26 = vpop.f32.mrb[1].mxu0 }
 0x109   : > { %v954_v27 = vpop.f32.mrb[2].mxu0 }
 0x10a   : > { %v956_v28 = vpop.f32.mrb[3].mxu0 }
 0x10f   : > { %v960_v29 = vpop.f32.mrb[4].mxu0 }
 0x110   : > { %v962_v30 = vpop.f32.mrb[5].mxu0 }
 0x111   : > { %v964_v31 = vpop.f32.mrb[6].mxu0 }
 0x112   : > { %v966_v32 = vpop.f32.mrb[7].mxu0 }
 0x117   : > { %v970_v34 = vpop.f32.mrb[8].mxu0 }
 0x118   : > { %v972_v35 = vpop.f32.mrb[9].mxu0 }
 0x119   : > { %v1999_v36 = vpop.f32.mrb[10].mxu0 }
 0x11a   : > { %v2001_v37 = vpop.f32.mrb[11].mxu0 }
 0x11f   : > { %v2003_v47 = vpop.f32.mrb[12].mxu0 }
 0x120   : > { %v2005_v51 = vpop.f32.mrb[13].mxu0 }
 0x121   : > { %v2007_v53 = vpop.f32.mrb[14].mxu0 }
 0x122   : > { %v2009_v55 = vpop.f32.mrb[15].mxu0 }
 0x125   : > { %v837_v38 = vpop.f32.mrb[0].mxu1 }
 0x126   : > { %v838_v40 = vadd.f32 %v837_v38, %v358_v33  ;;  %v839_v41 = vpop.f32.mrb[1].mxu1 }
 0x127   : > { %v840_v42 = vadd.f32 %v839_v41, %v358_v33  ;;  %v841_v43 = vpop.f32.mrb[2].mxu1  ;;  %v2011_v4 = vpop.f32.mrb[16].mxu0 }
 0x128   : > { %v951_v44 = vadd.f32 %v950_v25, %v838_v40  ;;  %v842_v45 = vadd.f32 %v841_v43, %v363_v39  ;;  %v843_v46 = vpop.f32.mrb[3].mxu1  ;;  %v2013_v8 = vpop.f32.mrb[17].mxu0 }
 0x129   : > { %v953_v48 = vadd.f32 %v952_v26, %v840_v42  ;;  %v844_v50 = vadd.f32 %v843_v46, %v363_v39  ;;  %v2015_v10 = vpop.f32.mrb[18].mxu0  ;;  %v388_v41 = vpop.permute.xlu0 %387 }
 0x12a   : > { %v955_v52 = vadd.f32 %v954_v27, %v842_v45  ;;  %v1429_v59 = vmul.f32 -1.442695, %v951_v44  ;;  %v2017_v12 = vpop.f32.mrb[19].mxu0 }
 0x12b   : > { %v957_v54 = vadd.f32 %v956_v28, %v844_v50  ;;  %v1430_v63 = vmul.f32 -1.442695, %v953_v48  ;;  %v393_v48 = vpop.permute.xlu1 %392 }
 0x12c   : > { %v1431_v5 = vmul.f32 -1.442695, %v955_v52  ;;  %1638 = vpow2.f32 %v1429_v59 }
 0x12d   : > { %v847_v56 = vpop.f32.mrb[4].mxu1  ;;  %1640 = vpow2.f32 %v1430_v63  ;;  %v1432_v13 = vmul.f32 -1.442695, %v957_v54 }
 0x12e   : > { %v848_v57 = vadd.f32 %v847_v56, %v368_v49  ;;  %v849_v58 = vpop.f32.mrb[5].mxu1  ;;  %1642 = vpow2.f32 %v1431_v5 }
 0x12f   : > { %v850_v61 = vadd.f32 %v849_v58, %v368_v49  ;;  %v851_v62 = vpop.f32.mrb[6].mxu1  ;;  %1644 = vpow2.f32 %v1432_v13  ;;  %v2019_v25 = vpop.f32.mrb[20].mxu0 }
 0x130   : > { %v961_v1 = vadd.f32 %v960_v29, %v848_v57  ;;  %v852_v2 = vadd.f32 %v851_v62, %v373_v60  ;;  %v853_v3 = vpop.f32.mrb[7].mxu1  ;;  %v2021_v29 = vpop.f32.mrb[21].mxu0 }
 0x131   : > { %v963_v6 = vadd.f32 %v962_v30, %v850_v61  ;;  %v854_v7 = vadd.f32 %v853_v3, %v373_v60 }
 0x132   : > { %v965_v9 = vadd.f32 %v964_v31, %v852_v2  ;;  %v1433_v16 = vmul.f32 -1.442695, %v961_v1 }
 0x133   : > { %v967_v11 = vadd.f32 %v966_v32, %v854_v7  ;;  %v1434_v22 = vmul.f32 -1.442695, %v963_v6  ;;  %v2024_v32 = vpop.f32.mrb[22].mxu0 }
 0x134   : > { %v1435_v26 = vmul.f32 -1.442695, %v965_v9  ;;  %1646 = vpow2.f32 %v1433_v16  ;;  %v2027_v39 = vpop.f32.mrb[23].mxu0  ;;  %v398_v9 = vpop.permute.xlu0 %397 }
 0x135   : > { %v857_v15 = vpop.f32.mrb[8].mxu1  ;;  %v1436_v30 = vmul.f32 -1.442695, %v967_v11  ;;  %1648 = vpow2.f32 %v1434_v22 }
 0x136   : > { %v858_v17 = vadd.f32 %v857_v15, %v378_v14  ;;  %v859_v18 = vpop.f32.mrb[9].mxu1  ;;  %v1639_v40 = vpop.eup %1638  ;;  %1650 = vpow2.f32 %v1435_v26 }
 0x137   : > { %v860_v20 = vadd.f32 %v859_v18, %v378_v14  ;;  %v861_v21 = vpop.f32.mrb[10].mxu1  ;;  %v1641_v43 = vpop.eup %1640  ;;  %1652 = vpow2.f32 %v1436_v30 }
 0x138   : > { %v971_v0 = vadd.f32 %v970_v34, %v858_v17  ;;  %v862_v23 = vadd.f32 %v861_v21, %v383_v19  ;;  %v863_v24 = vpop.f32.mrb[11].mxu1  ;;  %v2030_v57 = vpop.f32.mrb[24].mxu0  ;;  %v1054_v58 = vadd.f32 1.0, %v1641_v43 }
 0x139   : > { %v973_v27 = vadd.f32 %v972_v35, %v860_v20  ;;  %v864_v28 = vadd.f32 %v863_v24, %v383_v19  ;;  %v2033_v61 = vpop.f32.mrb[25].mxu0  ;;  %v403_v18 = vpop.permute.xlu1 %402 }
 0x13a   : > { %v975_v31 = vadd.f32 %v1999_v36, %v862_v23  ;;  %v1437_v33 = vmul.f32 -1.442695, %v971_v0  ;;  %v1643_v36 = vpop.eup %1642  ;;  %v2036_v2 = vpop.f32.mrb[26].mxu0 }
 0x13b   : > { %v977_v38 = vadd.f32 %v2001_v37, %v864_v28  ;;  %v1438_v34 = vmul.f32 -1.442695, %v973_v27  ;;  %v1053_v37 = vadd.f32 1.0, %v1639_v40  ;;  %v1645_v62 = vpop.eup %1644  ;;  %v1055_v63 = vadd.f32 1.0, %v1643_v36  ;;  %v2039_v5 = vpop.f32.mrb[27].mxu0 }
 0x13c   : > { %v1439_v35 = vmul.f32 -1.442695, %v975_v31  ;;  %1654 = vpow2.f32 %v1437_v33 }
 0x13d   : > { %v867_v42 = vpop.f32.mrb[12].mxu1  ;;  %v1440_v44 = vmul.f32 -1.442695, %v977_v38  ;;  %1656 = vpow2.f32 %v1438_v34 }
 0x13e   : > { %v868_v45 = vadd.f32 %v867_v42, %v388_v41  ;;  %v869_v46 = vpop.f32.mrb[13].mxu1  ;;  %1658 = vpow2.f32 %v1439_v35  ;;  %v1647_v6 = vpop.eup %1646 }
 0x13f   : > { %v870_v49 = vadd.f32 %v869_v46, %v388_v41  ;;  %v871_v50 = vpop.f32.mrb[14].mxu1  ;;  %1660 = vpow2.f32 %v1440_v44  ;;  %v1649_v13 = vpop.eup %1648  ;;  %v1057_v17 = vadd.f32 1.0, %v1647_v6 }
 0x140   : > { %v981_v52 = vadd.f32 %v2003_v47, %v868_v45  ;;  %v872_v54 = vadd.f32 %v871_v50, %v393_v48  ;;  %v873_v56 = vpop.f32.mrb[15].mxu1  ;;  %1662 = vrcp.f32 %v1053_v37  ;;  %v2042_v24 = vpop.f32.mrb[28].mxu0  ;;  %v1058_v27 = vadd.f32 1.0, %v1649_v13 }
 0x141   : > { %v983_v59 = vadd.f32 %v2005_v51, %v870_v49  ;;  %v874_v60 = vadd.f32 %v873_v56, %v393_v48  ;;  %1664 = vrcp.f32 %v1054_v58  ;;  %v1056_v51 = vadd.f32 1.0, %v1645_v62  ;;  %v2045_v31 = vpop.f32.mrb[29].mxu0  ;;  %v408_v45 = vpop.permute.xlu0 %407 }
 0x142   : > { %v985_v1 = vadd.f32 %v2007_v53, %v872_v54  ;;  %v1441_v3 = vmul.f32 -1.442695, %v981_v52  ;;  %1666 = vrcp.f32 %v1055_v63  ;;  %v1651_v53 = vpop.eup %1650  ;;  %v2048_v40 = vpop.f32.mrb[30].mxu0 }
 0x143   : > { %v987_v47 = vadd.f32 %v2009_v55, %v874_v60  ;;  %v1442_v7 = vmul.f32 -1.442695, %v983_v59  ;;  %v1653_v20 = vpop.eup %1652  ;;  %v1059_v38 = vadd.f32 1.0, %v1651_v53  ;;  %v2051_v42 = vpop.f32.mrb[31].mxu0 }
 0x144   : > { %v1443_v14 = vmul.f32 -1.442695, %v985_v1  ;;  %1668 = vpow2.f32 %v1441_v3  ;;  %v1060_v41 = vadd.f32 1.0, %v1653_v20 }
 0x145   : > { %v877_v11 = vpop.f32.mrb[16].mxu1  ;;  %1670 = vpow2.f32 %v1442_v7  ;;  %v1444_v21 = vmul.f32 -1.442695, %v987_v47  ;;  %v418_v53 = vpop.permute.xlu0 %417 }
 0x146   : > { %v878_v15 = vadd.f32 %v877_v11, %v398_v9  ;;  %v879_v16 = vpop.f32.mrb[17].mxu1  ;;  %v1655_v26 = vpop.eup %1654  ;;  %1672 = vrcp.f32 %v1056_v51 }
 0x147   : > { %v880_v19 = vadd.f32 %v879_v16, %v398_v9  ;;  %v881_v55 = vpop.f32.mrb[18].mxu1  ;;  %v1657_v33 = vpop.eup %1656  ;;  %1674 = vpow2.f32 %v1443_v14  ;;  %v1101_v44 = vadd.f32 1.0, %v1655_v26 }
 0x148   : > { %v991_v22 = vadd.f32 %v2011_v4, %v878_v15  ;;  %v882_v0 = vadd.f32 %v881_v55, %v403_v18  ;;  %v883_v23 = vpop.f32.mrb[19].mxu1  ;;  %v1659_v4 = vpop.eup %1658  ;;  %1676 = vrcp.f32 %v1057_v17 }
 0x149   : > { %v993_v28 = vadd.f32 %v2013_v8, %v880_v19  ;;  %v884_v30 = vadd.f32 %v883_v23, %v403_v18  ;;  %v1661_v43 = vpop.eup %1660  ;;  %1678 = vpow2.f32 %v1444_v21  ;;  %v1102_v8 = vadd.f32 1.0, %v1657_v33 }
 0x14a   : > { %v995_v34 = vadd.f32 %v2015_v10, %v882_v0  ;;  %1680 = vrcp.f32 %v1058_v27  ;;  %v2053_v36 = vpop.eup %1662  ;;  %v1103_v10 = vadd.f32 1.0, %v1659_v4  ;;  %v1104_v37 = vadd.f32 1.0, %v1661_v43 }
 0x14b   : > { %v997_v35 = vadd.f32 %v2017_v12, %v884_v30  ;;  %1682 = vrcp.f32 %v1059_v38  ;;  %v2055_v50 = vpop.eup %1664  ;;  %v413_v12 = vpop.permute.xlu1 %412  ;;  %v1445_v58 = vmul.f32 -1.442695, %v991_v22  ;;  %v1446_v1 = vmul.f32 -1.442695, %v993_v28 }
 0x14c   : > { %1684 = vrcp.f32 %v1060_v41  ;;  %v2057_v56 = vpop.eup %1666  ;;  %v1447_v7 = vmul.f32 -1.442695, %v995_v34 }
 0x14d   : > { %v887_v46 = vpop.f32.mrb[20].mxu1  ;;  %1686 = vrcp.f32 %v1101_v44  ;;  %v1448_v11 = vmul.f32 -1.442695, %v997_v35 }
 0x14e   : > { %v888_v48 = vadd.f32 %v887_v46, %v408_v45  ;;  %v889_v49 = vpop.f32.mrb[21].mxu1  ;;  %v1669_v63 = vpop.eup %1668  ;;  %1688 = vrcp.f32 %v1102_v8 }
 0x14f   : > { %v890_v52 = vadd.f32 %v889_v49, %v408_v45  ;;  %v891_v54 = vpop.f32.mrb[22].mxu1  ;;  %v1671_v6 = vpop.eup %1670  ;;  %1690 = vrcp.f32 %v1103_v10  ;;  %v1105_v14 = vadd.f32 1.0, %v1669_v63 }
 0x150   : > { %v1001_v59 = vadd.f32 %v2019_v25, %v888_v48  ;;  %v892_v60 = vadd.f32 %v891_v54, %v413_v12  ;;  %v893_v62 = vpop.f32.mrb[23].mxu1  ;;  %v2062_v9 = vpop.eup %1672  ;;  %1692 = vrcp.f32 %v1104_v37  ;;  %v1106_v16 = vadd.f32 1.0, %v1671_v6 }
 0x151   : > { %v1003_v3 = vadd.f32 %v2021_v29, %v890_v52  ;;  %v894_v47 = vadd.f32 %v893_v62, %v413_v12  ;;  %v1675_v25 = vpop.eup %1674  ;;  %1694 = vpow2.f32 %v1445_v58  ;;  %v423_v20 = vpop.permute.xlu1 %422 }
 0x152   : > { %v1005_v51 = vadd.f32 %v2024_v32, %v892_v60  ;;  %v2065_v15 = vpop.eup %1676  ;;  %1696 = vpow2.f32 %v1446_v1  ;;  %v1107_v55 = vadd.f32 1.0, %v1675_v25  ;;  %v1449_v0 = vmul.f32 -1.442695, %v1001_v59 }
 0x153   : > { %v1007_v13 = vadd.f32 %v2027_v39, %v894_v47  ;;  %v1679_v17 = vpop.eup %1678  ;;  %1698 = vpow2.f32 %v1447_v7  ;;  %v1450_v4 = vmul.f32 -1.442695, %v1003_v3  ;;  %v1181_v47 = vld [vmem:[%s2090_s13] sm:$0xff] }
 0x154   : > { %v2067_v32 = vpop.eup %1680  ;;  %1700 = vpow2.f32 %v1448_v11  ;;  %v1108_v30 = vadd.f32 1.0, %v1679_v17  ;;  %v1451_v48 = vmul.f32 -1.442695, %v1005_v51  ;;  %v1183_v17 = vld [vmem:[%s2090_s13 + $0x10] sm:$0xff] }
 0x155   : > { %v897_v29 = vpop.f32.mrb[24].mxu1  ;;  %v2069_v22 = vpop.eup %1682  ;;  %1702 = vrcp.f32 %v1105_v14  ;;  %v1452_v52 = vmul.f32 -1.442695, %v1007_v13 }
 0x156   : > { %v898_v18 = vadd.f32 %v897_v29, %v418_v53  ;;  %v899_v19 = vpop.f32.mrb[25].mxu1  ;;  %v2072_v28 = vpop.eup %1684  ;;  %1704 = vrcp.f32 %v1106_v16 }
 0x157   : > { %v900_v21 = vadd.f32 %v899_v19, %v418_v53  ;;  %v901_v39 = vpop.f32.mrb[26].mxu1  ;;  %v1687_v34 = vpop.eup %1686  ;;  %v1184_v19 = vld [vmem:[%s2090_s13 + $0x18] sm:$0xff] }
 0x158   : > { %v1011_v23 = vadd.f32 %v2030_v57, %v898_v18  ;;  %v902_v26 = vadd.f32 %v901_v39, %v423_v20  ;;  %v903_v27 = vpop.f32.mrb[27].mxu1  ;;  %v2076_v35 = vpop.eup %1688  ;;  %v1185_v39 = vld [vmem:[%s2090_s13 + $0x20] sm:$0xff] }
 0x159   : > { %v1013_v33 = vadd.f32 %v2033_v61, %v900_v21  ;;  %v904_v38 = vadd.f32 %v903_v27, %v423_v20  ;;  %v2079_v43 = vpop.eup %1690  ;;  %v428_v61 = vpop.permute.xlu0 %427 }
 0x15a   : > { %1706 = vtanh.f32 %v1011_v23  ;;  %v1015_v41 = vadd.f32 %v2036_v2, %v902_v26  ;;  %v2084_v44 = vpop.eup %1692  ;;  %v1191_v26 = vmul.f32 %v2079_v43, %v1183_v17 }
 0x15b   : > { %1708 = vrcp.f32 %v1107_v55  ;;  %v1017_v57 = vadd.f32 %v2039_v5, %v904_v38  ;;  %v1695_v45 = vpop.eup %1694  ;;  %v433_v5 = vpop.permute.xlu1 %432 }
 0x15c   : > { %1710 = vpow2.f32 %v1449_v0  ;;  %v1697_v10 = vpop.eup %1696  ;;  %v1149_v62 = vadd.f32 1.0, %v1695_v45 }
 0x15d   : > { %1712 = vrcp.f32 %v1108_v30  ;;  %v907_v8 = vpop.f32.mrb[28].mxu1  ;;  %v1699_v12 = vpop.eup %1698  ;;  %v1150_v6 = vadd.f32 1.0, %v1697_v10 }
 0x15e   : > { %1714 = vpow2.f32 %v1450_v4  ;;  %v908_v46 = vadd.f32 %v907_v8, %v428_v61  ;;  %v909_v2 = vpop.f32.mrb[29].mxu1  ;;  %v1701_v60 = vpop.eup %1700  ;;  %v1151_v16 = vadd.f32 1.0, %v1699_v12  ;;  %v1187_v8 = vld [vmem:[%s2090_s13 + $0x30] sm:$0xff] }
 0x15f   : > { %1716 = vtanh.f32 %v1013_v33  ;;  %v910_v49 = vadd.f32 %v909_v2, %v428_v61  ;;  %v911_v37 = vpop.f32.mrb[30].mxu1  ;;  %v1703_v3 = vpop.eup %1702  ;;  %v1152_v18 = vadd.f32 1.0, %v1701_v60  ;;  %v1192_v33 = vmul.f32 %v2084_v44, %v1184_v19  ;;  %v1186_v44 = vld [vmem:[%s2090_s13 + $0x28] sm:$0xff] }
 0x160   : > { %1718 = vtanh.f32 %v1015_v41  ;;  %v1021_v54 = vadd.f32 %v2042_v24, %v908_v46  ;;  %v912_v58 = vadd.f32 %v911_v37, %v433_v5  ;;  %v913_v59 = vpop.f32.mrb[31].mxu1  ;;  %v2096_v51 = vpop.eup %1704 }
 0x161   : > { %1720 = vtanh.f32 %v1017_v57  ;;  %v1023_v63 = vadd.f32 %v2045_v31, %v910_v49  ;;  %v914_v1 = vadd.f32 %v913_v59, %v433_v5  ;;  %v1189_v31 = vmul.f32 %v1687_v34, %v1181_v47  ;;  %v1188_v5 = vld [vmem:[%s2090_s13 + $0x38] sm:$0xff] }
 0x162   : > { %1722 = vtanh.f32 %v1021_v54  ;;  %v1025_v7 = vadd.f32 %v2048_v40, %v912_v58  ;;  %v1194_v10 = vmul.f32 %v2096_v51, %v1186_v44 }
 0x163   : > { %1724 = vpow2.f32 %v1451_v48  ;;  %v1027_v24 = vadd.f32 %v2051_v42, %v914_v1  ;;  %v1182_v42 = vld [vmem:[%s2090_s13 + $0x8] sm:$0xff] }
 0x164   : > { %v1707_v11 = vpop.eup %1706  ;;  %1726 = vpow2.f32 %v1452_v52  ;;  %v1190_v21 = vmul.f32 %v2076_v35, %v1182_v42 }
 0x165   : > { %v2099_v13 = vpop.eup %1708  ;;  %1728 = vrcp.f32 %v1149_v62  ;;  %v1197_v25 = vmul.f32 %v1707_v11, %v2053_v36 }
 0x166   : > { %v1711_v14 = vpop.eup %1710  ;;  %1730 = vrcp.f32 %v1150_v6  ;;  %v1195_v37 = vmul.f32 %v2099_v13, %v1187_v8 }
 0x167   : > { %v2108_v40 = vpop.eup %1712  ;;  %v1205_v53 = vadd.f32 %v1197_v25, %v1189_v31  ;;  %1732 = vtanh.f32 %v1023_v63  ;;  %v1153_v55 = vadd.f32 1.0, %v1711_v14 }
 0x168   : > { %v1715_v29 = vpop.eup %1714  ;;  %1734 = vtanh.f32 %v1025_v7 }
 0x169   : > { %v1717_v36 = vpop.eup %1716  ;;  %1736 = vtanh.f32 %v1205_v53  ;;  %1237 = vst [vmem:[%s2106_s15] sm:$0xff] %v1205_v53  ;;  %v1154_v45 = vadd.f32 1.0, %v1715_v29 }
 0x16a   : > { %v1719_v20 = vpop.eup %1718  ;;  %v1198_v0 = vmul.f32 %v1717_v36, %v2055_v50  ;;  %1738 = vtanh.f32 %v1027_v24  ;;  %v1193_v50 = vmul.f32 %v1703_v3, %v1185_v39 }
 0x16b   : > { %v1721_v23 = vpop.eup %1720  ;;  %1740 = vrcp.f32 %v1151_v16  ;;  %v1199_v27 = vmul.f32 %v1719_v20, %v2057_v56 }
 0x16c   : > { %v1723_v30 = vpop.eup %1722  ;;  %1742 = vrcp.f32 %v1152_v18  ;;  %v1206_v38 = vadd.f32 %v1198_v0, %v1190_v21  ;;  %v1200_v34 = vmul.f32 %v1721_v23, %v2062_v9 }
 0x16d   : > { %v1725_v4 = vpop.eup %1724  ;;  %1744 = vrcp.f32 %v1153_v55  ;;  %v1207_v41 = vadd.f32 %v1199_v27, %v1191_v26  ;;  %v1201_v35 = vmul.f32 %v1723_v30, %v2065_v15 }
 0x16e   : > { %v1727_v57 = vpop.eup %1726  ;;  %1746 = vtanh.f32 %v1206_v38  ;;  %1238 = vst [vmem:[%s2106_s15 + $0x8] sm:$0xff] %v1206_v38  ;;  %v1208_v56 = vadd.f32 %v1200_v34, %v1192_v33  ;;  %v1155_v2 = vadd.f32 1.0, %v1725_v4 }
 0x16f   : > { %v1729_v43 = vpop.eup %1728  ;;  %1748 = vtanh.f32 %v1207_v41  ;;  %1239 = vst [vmem:[%s2106_s15 + $0x10] sm:$0xff] %v1207_v41  ;;  %v1209_v61 = vadd.f32 %v1201_v35, %v1193_v50  ;;  %v1156_v54 = vadd.f32 1.0, %v1727_v57 }
 0x170   : > { %v1731_v9 = vpop.eup %1730  ;;  %1750 = vtanh.f32 %v1208_v56  ;;  %1240 = vst [vmem:[%s2106_s15 + $0x18] sm:$0xff] %v1208_v56 }
 0x171   : > { %v1733_v46 = vpop.eup %1732  ;;  %1752 = vtanh.f32 %v1209_v61  ;;  %1241 = vst [vmem:[%s2106_s15 + $0x20] sm:$0xff] %v1209_v61 }
 0x172   : > { %v1735_v15 = vpop.eup %1734  ;;  %v1202_v48 = vmul.f32 %v1733_v46, %v2067_v32  ;;  %1754 = vrcp.f32 %v1154_v45  ;;  %v1196_v32 = vmul.f32 %v2108_v40, %v1188_v5 }
 0x173   : > { %v1737_v49 = vpop.eup %1736  ;;  %v1203_v12 = vmul.f32 %v1735_v15, %v2069_v22  ;;  %1756 = vrcp.f32 %v1155_v2 }
 0x174   : > { %v1739_v52 = vpop.eup %1738  ;;  %v1221_v58 = vmul.f32 %v1737_v49, %v1729_v43  ;;  %v1210_v59 = vadd.f32 %v1202_v48, %v1194_v10 }
 0x175   : > { %v1741_v60 = vpop.eup %1740  ;;  %v1211_v62 = vadd.f32 %v1203_v12, %v1195_v37  ;;  %v1204_v63 = vmul.f32 %v1739_v52, %v2072_v28 }
 0x176   : > { %v1743_v1 = vpop.eup %1742  ;;  %1229 = vst [vmem:[%s2136_s20] sm:$0xff] %v1221_v58  ;;  %1758 = vtanh.f32 %v1210_v59  ;;  %1242 = vst [vmem:[%s2106_s15 + $0x28] sm:$0xff] %v1210_v59 }
 0x177   : > { %v1745_v22 = vpop.eup %1744  ;;  %1760 = vtanh.f32 %v1211_v62  ;;  %1243 = vst [vmem:[%s2106_s15 + $0x30] sm:$0xff] %v1211_v62  ;;  %v1212_v3 = vadd.f32 %v1204_v63, %v1196_v32 }
 0x178   : > { %v1747_v47 = vpop.eup %1746  ;;  %1762 = vrcp.f32 %v1156_v54 }
 0x179   : > { %v1749_v6 = vpop.eup %1748  ;;  %v1222_v7 = vmul.f32 %v1747_v47, %v1731_v9  ;;  %1764 = vtanh.f32 %v1212_v3  ;;  %1244 = vst [vmem:[%s2106_s15 + $0x38] sm:$0xff] %v1212_v3 }
 0x17a   : > { %v1751_v51 = vpop.eup %1750  ;;  %v1223_v28 = vmul.f32 %v1749_v6, %v1741_v60 }
 0x17b   : > { %v1753_v24 = vpop.eup %1752  ;;  %1230 = vst [vmem:[%s2136_s20 + $0x8] sm:$0xff] %v1222_v7  ;;  %v1224_v11 = vmul.f32 %v1751_v51, %v1743_v1 }
 0x17c   : > { %1231 = vst [vmem:[%s2136_s20 + $0x10] sm:$0xff] %v1223_v28  ;;  %v1225_v13 = vmul.f32 %v1753_v24, %v1745_v22  ;;  %v1755_v31 = vpop.eup %1754 }
 0x17d   : > { %1232 = vst [vmem:[%s2136_s20 + $0x18] sm:$0xff] %v1224_v11  ;;  %v1757_v25 = vpop.eup %1756 }
 0x17e   : > { %1233 = vst [vmem:[%s2136_s20 + $0x20] sm:$0xff] %v1225_v13 }
 0x180   : > { %v1759_v14 = vpop.eup %1758 }
 0x181   : > { %v1761_v40 = vpop.eup %1760  ;;  %v1226_v42 = vmul.f32 %v1759_v14, %v1755_v31 }
 0x182   : > { %v1763_v16 = vpop.eup %1762  ;;  %v1227_v53 = vmul.f32 %v1761_v40, %v1757_v25 }
 0x183   : > { %v1765_v29 = vpop.eup %1764  ;;  %1234 = vst [vmem:[%s2136_s20 + $0x28] sm:$0xff] %v1226_v42 }
 0x184   : > { %1235 = vst [vmem:[%s2136_s20 + $0x30] sm:$0xff] %v1227_v53  ;;  %v1228_v17 = vmul.f32 %v1765_v29, %v1763_v16 }
 0x186   : > { %1236 = vst [vmem:[%s2136_s20 + $0x38] sm:$0xff] %v1228_v17 }
 0x187 PF: > { %s16_s18 = sadd.s32 1, %s1772_s18  }
 0x188   : > { %p13_p4 = scmp.ge.s32.totalorder %s16_s18, 4  }
 0x18a   :  { %15 = sbr.rel (!%p13_p4) target bundleno = 1 (0x1), region = 81 }

</bundles_post_ra>
